<compile_context>
chip_gen: v5e
topology: v5e:2x2
jax: 0.10.0
libtpu: 0.0.40
codegen_flags: <defaults>
</compile_context>

<pallas_src>
import jax
import jax.numpy as jnp
from jax.experimental import pallas as pl
from jax.experimental.pallas import tpu as pltpu

_MIN_ROWS_FOR_TWO_TILES = 1024  # below this, one tile beats splitting for 2 TCs


def _round_up(x, n):
    return ((x + n - 1) // n) * n


def _vmem_budget_bytes():
    """Generation-aware VMEM budget: half of physical VMEM (v5e/v6e -> 64 MiB,
    v7x -> 32 MiB), leaving headroom for compiler scratch."""
    cap = None
    try:
        cap = getattr(pltpu.get_tpu_info(), "vmem_capacity_bytes", None)
    except Exception:
        cap = None
    if not cap:
        cap = 64 << 20  # conservative fallback == v7x per-TC physical VMEM
    return cap // 2


def _sublane_align(itemsize):
    # 8 sublanes per vreg at 32-bit; sub-32-bit dtypes pack along sublanes.
    return max(8, 32 // max(1, itemsize))


def _choose_tm(m, n_in, n_out, itemsize, budget_bytes, align):
    """Largest batch tile (multiple of `align`) whose double-buffered h/out tiles
    plus the resident (single-buffered) weight/bias fit the VMEM budget."""
    fixed = (n_in * n_out + n_out) * itemsize   # weight + bias, Buffered(1)
    per_row = 2 * (n_in + n_out) * itemsize     # double-buffered h + out tiles
    if fixed + align * per_row > budget_bytes:
        # TODO(synk): add an n_out tiling fallback for very large output heads.
        raise ValueError(
            "MeanLayer weight does not fit the VMEM budget "
            f"({fixed} B resident + minimal tiles > {budget_bytes} B); tile n_out."
        )
    tm = (budget_bytes - fixed) // per_row
    return max(align, (tm // align) * align)


def _mean_layer_kernel(h_ref, wt_ref, b_ref, out_ref):
    # h_ref:   (TM, n_in)     VMEM -- one batch tile (streamed over the grid)
    # wt_ref:  (n_in, n_out)  VMEM -- full W^T, resident across all grid steps
    # b_ref:   (1, n_out)     VMEM
    # out_ref: (TM, n_out)    VMEM
    acc = jnp.dot(h_ref[...], wt_ref[...], preferred_element_type=jnp.float32)
    out_ref[...] = (acc + b_ref[...]).astype(out_ref.dtype)


def mean_layer_forward(h, weight, bias, *, tm=None, weight_is_transposed=False):
    """Pallas TPU implementation of MeanLayer.forward: mean = h @ W^T + b.

    h:      (m, n_in)
    weight: (n_out, n_in) in PyTorch nn.Linear convention, or (n_in, n_out) when
            weight_is_transposed=True (preferred: store the param pre-transposed
            at init so no per-call transpose runs in the hot path).
    bias:   (n_out,)
    returns (m, n_out)
    """
    m, n_in = h.shape
    dtype = h.dtype
    itemsize = jnp.dtype(dtype).itemsize

    if weight_is_transposed:
        w_t = weight
        n_out = w_t.shape[1]
    else:
        n_out = weight.shape[0]
        # Tiny one-off transpose so the MXU sees the canonical (K, N) operand and
        # no per-grid-step transpose of the grid-invariant weight can sneak in.
        w_t = weight.T
    b2 = bias.reshape(1, n_out)

    budget = _vmem_budget_bytes()
    align = _sublane_align(itemsize)
    if tm is None:
        tm = _choose_tm(m, n_in, n_out, itemsize, budget, align)
    if m <= tm:
        if m >= _MIN_ROWS_FOR_TWO_TILES:
            # Keep >= 2 grid steps so ("parallel",) can shard across both v7x
            # TensorCores and the h/out DMAs still overlap with compute.
            tm = _round_up(pl.cdiv(m, 2), align)
        else:
            tm = m  # single full block (any m is legal when block == full dim)
    grid = (pl.cdiv(m, tm),)

    cost = pl.CostEstimate(
        flops=2 * m * n_in * n_out,
        transcendentals=0,
        bytes_accessed=(m * n_in + n_in * n_out + n_out + m * n_out) * itemsize,
    )

    def build(single_buffer_params):
        wb_kw = {"pipeline_mode": pl.Buffered(1)} if single_buffer_params else {}
        return pl.pallas_call(
            _mean_layer_kernel,
            out_shape=jax.ShapeDtypeStruct((m, n_out), dtype),
            grid_spec=pltpu.PrefetchScalarGridSpec(
                num_scalar_prefetch=0,
                grid=grid,
                in_specs=[
                    # Batch tile: streams / double-buffers across the grid.
                    pl.BlockSpec((tm, n_in), lambda i: (i, 0)),
                    # W^T & bias: constant index_map -> fetched once, VMEM-resident.
                    pl.BlockSpec((n_in, n_out), lambda i: (0, 0), **wb_kw),
                    pl.BlockSpec((1, n_out), lambda i: (0, 0), **wb_kw),
                ],
                out_specs=pl.BlockSpec((tm, n_out), lambda i: (i, 0)),
            ),
            compiler_params=pltpu.CompilerParams(
                # Batch tiles are independent -> shard across TCs (v7x megacore).
                dimension_semantics=("parallel",),
                vmem_limit_bytes=budget,
            ),
            cost_estimate=cost,
        )

    try:
        return build(True)(h, w_t, b2)
    except Exception:
        # Older JAX may reject Buffered(1); fall back to default double buffering
        # (costs only the tiny extra weight/bias buffer).
        return build(False)(h, w_t, b2)


if __name__ == "__main__":
    key = jax.random.PRNGKey(0)

    # --- Case 1: small shapes matching the module's test-scale forward ---------
    m, n_in, n_out = 8, 32, 16
    k_h, k_w, k_b, key = jax.random.split(key, 4)
    bound = 1.0 / (n_in ** 0.5)  # nn.Linear default init range
    weight = jax.random.uniform(k_w, (n_out, n_in), jnp.float32, -bound, bound)
    bias = jax.random.uniform(k_b, (n_out,), jnp.float32, -bound, bound)
    h = jax.random.normal(k_h, (m, n_in), jnp.float32)

    mean = jax.block_until_ready(mean_layer_forward(h, weight, bias))
    ref = h @ weight.T + bias
    assert mean.shape == (m, n_out)
    assert jnp.allclose(mean, ref, atol=1e-5, rtol=1e-5)

    # --- Case 2: multi-tile grid (resident weight, pipelined h/out DMAs) -------
    m2, n_in2, n_out2 = 512, 64, 96
    k_h2, k_w2, k_b2, key = jax.random.split(key, 4)
    bound2 = 1.0 / (n_in2 ** 0.5)
    weight2 = jax.random.uniform(k_w2, (n_out2, n_in2), jnp.float32, -bound2, bound2)
    bias2 = jax.random.uniform(k_b2, (n_out2,), jnp.float32, -bound2, bound2)
    h2 = jax.random.normal(k_h2, (m2, n_in2), jnp.float32)

    mean2 = jax.block_until_ready(mean_layer_forward(h2, weight2, bias2, tm=128))
    ref2 = h2 @ weight2.T + bias2
    assert mean2.shape == (m2, n_out2)
    assert jnp.allclose(mean2, ref2, atol=1e-4, rtol=1e-4)

    # --- Case 3: partial last tile + pre-transposed weight fast path -----------
    m3 = 300
    h3 = jax.random.normal(key, (m3, n_in2), jnp.float32)
    mean3 = jax.block_until_ready(
        mean_layer_forward(h3, weight2.T, bias2, tm=128, weight_is_transposed=True)
    )
    ref3 = h3 @ weight2.T + bias2
    assert mean3.shape == (m3, n_out2)
    assert jnp.allclose(mean3, ref3, atol=1e-4, rtol=1e-4)

    print("KERNEL_OK")
</pallas_src>

<mosaic_0001>
module attributes {stable_mosaic.version = 11 : i64} {
  func.func @_mean_layer_kernel(%arg0: i32, %arg1: memref<8x32xf32, #tpu.memory_space<vmem>>, %arg2: memref<32x16xf32, #tpu.memory_space<vmem>>, %arg3: memref<1x16xf32, #tpu.memory_space<vmem>>, %arg4: memref<8x16xf32, #tpu.memory_space<vmem>>) attributes {dimension_semantics = [#tpu.dimension_semantics<parallel>], iteration_bounds = array<i64: 1>, scalar_prefetch = 0 : i64, scratch_operands = 0 : i64, tpu.core_type = #tpu.core_type<tc>, window_params = [{transform_indices = @transform_0, window_bounds = array<i64: 8, 32>}, {pipeline_mode = #tpu.pipeline_mode<synchronous>, transform_indices = @transform_1, window_bounds = array<i64: 32, 16>}, {pipeline_mode = #tpu.pipeline_mode<synchronous>, transform_indices = @transform_2, window_bounds = array<i64: 1, 16>}, {transform_indices = @transform_3, window_bounds = array<i64: 8, 16>}]} {
    %c0 = arith.constant 0 : index
    %c0_0 = arith.constant 0 : index
    %0 = vector.load %arg1[%c0, %c0_0] : memref<8x32xf32, #tpu.memory_space<vmem>>, vector<8x32xf32>
    %c0_1 = arith.constant 0 : index
    %c0_2 = arith.constant 0 : index
    %1 = vector.load %arg2[%c0_1, %c0_2] : memref<32x16xf32, #tpu.memory_space<vmem>>, vector<32x16xf32>
    %cst = arith.constant dense<0.000000e+00> : vector<8x16xf32>
    %2 = tpu.matmul %0, %1, %cst {dimension_numbers = #tpu.dot_dimension_numbers<[1], [0], [0], [1], [0, 0, 1, 1], [], []>} : vector<8x32xf32>, vector<32x16xf32>, vector<8x16xf32> -> vector<8x16xf32>
    %c0_3 = arith.constant 0 : index
    %c0_4 = arith.constant 0 : index
    %3 = vector.load %arg3[%c0_3, %c0_4] : memref<1x16xf32, #tpu.memory_space<vmem>>, vector<1x16xf32>
    %4 = vector.broadcast %3 : vector<1x16xf32> to vector<8x16xf32>
    %5 = arith.addf %2, %4 : vector<8x16xf32>
    %c0_5 = arith.constant 0 : index
    %c0_6 = arith.constant 0 : index
    %6 = vector.load %arg4[%c0_5, %c0_6] : memref<8x16xf32, #tpu.memory_space<vmem>>, vector<8x16xf32>
    tpu.vector_store %arg4[%c0_5, %c0_6], %5 {strides = array<i32>} : memref<8x16xf32, #tpu.memory_space<vmem>>, vector<8x16xf32>,
    return
  }
  func.func @transform_0(%arg0: i32) -> (i32, i32) {
    %c0_i32 = arith.constant 0 : i32
    %c0_i32_0 = arith.constant 0 : i32
    return %arg0, %c0_i32 : i32, i32
  }
  func.func @transform_1(%arg0: i32) -> (i32, i32) {
    %c0_i32 = arith.constant 0 : i32
    %c0_i32_0 = arith.constant 0 : i32
    %c0_i32_1 = arith.constant 0 : i32
    return %c0_i32, %c0_i32_0 : i32, i32
  }
  func.func @transform_2(%arg0: i32) -> (i32, i32) {
    %c0_i32 = arith.constant 0 : i32
    %c0_i32_0 = arith.constant 0 : i32
    %c0_i32_1 = arith.constant 0 : i32
    return %c0_i32, %c0_i32_0 : i32, i32
  }
  func.func @transform_3(%arg0: i32) -> (i32, i32) {
    %c0_i32 = arith.constant 0 : i32
    %c0_i32_0 = arith.constant 0 : i32
    return %arg0, %c0_i32 : i32, i32
  }
}

module attributes {stable_mosaic.version = 11 : i64} {
  func.func @_mean_layer_kernel(%arg0: i32, %arg1: memref<8x32xf32, #tpu.memory_space<vmem>>, %arg2: memref<32x16xf32, #tpu.memory_space<vmem>>, %arg3: memref<1x16xf32, #tpu.memory_space<vmem>>, %arg4: memref<8x16xf32, #tpu.memory_space<vmem>>) attributes {dimension_semantics = [#tpu.dimension_semantics<parallel>], iteration_bounds = array<i64: 1>, scalar_prefetch = 0 : i64, scratch_operands = 0 : i64, tpu.core_type = #tpu.core_type<tc>, window_params = [{transform_indices = @transform_0, window_bounds = array<i64: 8, 32>}, {pipeline_mode = #tpu.pipeline_mode<synchronous>, transform_indices = @transform_1, window_bounds = array<i64: 32, 16>}, {pipeline_mode = #tpu.pipeline_mode<synchronous>, transform_indices = @transform_2, window_bounds = array<i64: 1, 16>}, {transform_indices = @transform_3, window_bounds = array<i64: 8, 16>}]} {
    %c0 = arith.constant 0 : index
    %c0_0 = arith.constant 0 : index
    %0 = vector.load %arg1[%c0, %c0_0] : memref<8x32xf32, #tpu.memory_space<vmem>>, vector<8x32xf32>
    %c0_1 = arith.constant 0 : index
    %c0_2 = arith.constant 0 : index
    %1 = vector.load %arg2[%c0_1, %c0_2] : memref<32x16xf32, #tpu.memory_space<vmem>>, vector<32x16xf32>
    %cst = arith.constant dense<0.000000e+00> : vector<8x16xf32>
    %2 = tpu.matmul %0, %1, %cst {dimension_numbers = #tpu.dot_dimension_numbers<[1], [0], [0], [1], [0, 0, 1, 1], [], []>} : vector<8x32xf32>, vector<32x16xf32>, vector<8x16xf32> -> vector<8x16xf32>
    %c0_3 = arith.constant 0 : index
    %c0_4 = arith.constant 0 : index
    %3 = vector.load %arg3[%c0_3, %c0_4] : memref<1x16xf32, #tpu.memory_space<vmem>>, vector<1x16xf32>
    %4 = vector.broadcast %3 : vector<1x16xf32> to vector<8x16xf32>
    %5 = arith.addf %2, %4 : vector<8x16xf32>
    %c0_5 = arith.constant 0 : index
    %c0_6 = arith.constant 0 : index
    %6 = vector.load %arg4[%c0_5, %c0_6] : memref<8x16xf32, #tpu.memory_space<vmem>>, vector<8x16xf32>
    tpu.vector_store %arg4[%c0_5, %c0_6], %5 {strides = array<i32>} : memref<8x16xf32, #tpu.memory_space<vmem>>, vector<8x16xf32>,
    return
  }
  func.func @transform_0(%arg0: i32) -> (i32, i32) {
    %c0_i32 = arith.constant 0 : i32
    %c0_i32_0 = arith.constant 0 : i32
    return %arg0, %c0_i32 : i32, i32
  }
  func.func @transform_1(%arg0: i32) -> (i32, i32) {
    %c0_i32 = arith.constant 0 : i32
    %c0_i32_0 = arith.constant 0 : i32
    %c0_i32_1 = arith.constant 0 : i32
    return %c0_i32, %c0_i32_0 : i32, i32
  }
  func.func @transform_2(%arg0: i32) -> (i32, i32) {
    %c0_i32 = arith.constant 0 : i32
    %c0_i32_0 = arith.constant 0 : i32
    %c0_i32_1 = arith.constant 0 : i32
    return %c0_i32, %c0_i32_0 : i32, i32
  }
  func.func @transform_3(%arg0: i32) -> (i32, i32) {
    %c0_i32 = arith.constant 0 : i32
    %c0_i32_0 = arith.constant 0 : i32
    return %arg0, %c0_i32 : i32, i32
  }
}

</mosaic_0001>

<bundles_post_ra>
// kernel: tpu_custom_call.1
= control target key start
LH: loop header
LB: loop body
LE: loop exit
PB: predicated region body
PF: predicated region fallthrough
CT: control target
= control target key end

     0   :  { %s137_s0 = inlined_call_operand.vmem [shape: f32[8,32], index: 0, kind: input, shape index: {}]   ;;  %s138_s1 = inlined_call_operand.vmem [shape: f32[32,16], index: 1, kind: input, shape index: {}]   ;;  %s139_s2 = inlined_call_operand.vmem [shape: f32[1,16], index: 2, kind: input, shape index: {}]   ;;  %s140_s3 = inlined_call_operand.hbm [shape: f32[8,16], index: 3, kind: output, shape index: {}]  }
   0x1   :  { %v19_v0 = vld [vmem:[%s138_s1 + $0x18] sm:$0xff]  ;;  %v18_v1 = vld [vmem:[%s138_s1 + $0x10] sm:$0xff]  ;;  %v17_v2 = vld [vmem:[%s138_s1 + $0x8] sm:$0xff] }
   0x2   :  { %40 = vmatpush.msra.mxu0 %v19_v0 }
   0x3   :  { %8 = vsyncpa [#allocation3], 0  ;;  %v16_v3 = vld [vmem:[%s138_s1] sm:$0xff]  ;;  %vm24_vm0 = vcmask 261120   ;;  %s95_s24 = smov [#allocation2]   ;;  %s57_s28 = sshll.u32 %s140_s3, 4  ;;  %s58_s28 = int_to_ptr.hbm [resolvable:$true] %s57_s28 }
   0x4   :  { %41 = vmatpush.msra.mxu0 %v18_v1  ;;  %v15_v4 = vld [vmem:[%s137_s0] sm:$0xff]  ;;  %s55_s25 = sshll.u32 %s95_s24, 4  ;;  %vm48_vm1 = vcmask 130048   ;;  %s56_s25 = int_to_ptr.vmem [resolvable:$true] %s55_s25 }
   0x5   :  { %v68_v5 = vld [vmem:[%s139_s2] ss:$0 sm:$0xff] }
   0x6   :  { %42 = vmatpush.msra.mxu0 %v17_v2 }
   0x8   :  { %43 = vmatpush.msra.mxu0 %v16_v3 }
   0x9   :  { %66 = vmatmul.msk.f32.vlgmr.msra.gmra.mxu0 %vm24_vm0, %v15_v4 }
  0x86   :  { %v45_v6 = vpop.f32.mrf.mxu0 }
  0x87   :  { %v46_v7 = vadd.f32 %v68_v5, %v45_v6 }
  0x89   :  { %49 = vst.msk [vmem:[#allocation2] sm:$0xff] %vm48_vm1, %v46_v7 }
  0x8a   :  { %60 = dma.vmem_to_hbm [thread:$0]  %s56_s25, 128, %s58_s28, [#allocation3]  }
  0x8b   :  { %93 = dma.done.wait [#allocation3], 128  }
  0x8c   :  { %94 = vsyncadd [#allocation3], 4294967168 }
  0x8d   :  { %65 = vsyncpa [#allocation3], 1 }

// kernel: tpu_custom_call.1
= control target key start
LH: loop header
LB: loop body
LE: loop exit
PB: predicated region body
PF: predicated region fallthrough
CT: control target
= control target key end

     0   :  { %s137_s0 = inlined_call_operand.vmem [shape: f32[8,32], index: 0, kind: input, shape index: {}]   ;;  %s138_s1 = inlined_call_operand.vmem [shape: f32[32,16], index: 1, kind: input, shape index: {}]   ;;  %s139_s2 = inlined_call_operand.vmem [shape: f32[1,16], index: 2, kind: input, shape index: {}]   ;;  %s140_s3 = inlined_call_operand.hbm [shape: f32[8,16], index: 3, kind: output, shape index: {}]  }
   0x1   :  { %v19_v0 = vld [vmem:[%s138_s1 + $0x18] sm:$0xff]  ;;  %v18_v1 = vld [vmem:[%s138_s1 + $0x10] sm:$0xff]  ;;  %v17_v2 = vld [vmem:[%s138_s1 + $0x8] sm:$0xff] }
   0x2   :  { %40 = vmatpush.msra.mxu0 %v19_v0 }
   0x3   :  { %8 = vsyncpa [#allocation3], 0  ;;  %v16_v3 = vld [vmem:[%s138_s1] sm:$0xff]  ;;  %vm24_vm0 = vcmask 261120   ;;  %s95_s24 = smov [#allocation2]   ;;  %s57_s28 = sshll.u32 %s140_s3, 4  ;;  %s58_s28 = int_to_ptr.hbm [resolvable:$true] %s57_s28 }
   0x4   :  { %41 = vmatpush.msra.mxu0 %v18_v1  ;;  %v15_v4 = vld [vmem:[%s137_s0] sm:$0xff]  ;;  %s55_s25 = sshll.u32 %s95_s24, 4  ;;  %vm48_vm1 = vcmask 130048   ;;  %s56_s25 = int_to_ptr.vmem [resolvable:$true] %s55_s25 }
   0x5   :  { %v68_v5 = vld [vmem:[%s139_s2] ss:$0 sm:$0xff] }
   0x6   :  { %42 = vmatpush.msra.mxu0 %v17_v2 }
   0x8   :  { %43 = vmatpush.msra.mxu0 %v16_v3 }
   0x9   :  { %66 = vmatmul.msk.f32.vlgmr.msra.gmra.mxu0 %vm24_vm0, %v15_v4 }
  0x86   :  { %v45_v6 = vpop.f32.mrf.mxu0 }
  0x87   :  { %v46_v7 = vadd.f32 %v68_v5, %v45_v6 }
  0x89   :  { %49 = vst.msk [vmem:[#allocation2] sm:$0xff] %vm48_vm1, %v46_v7 }
  0x8a   :  { %60 = dma.vmem_to_hbm [thread:$0]  %s56_s25, 128, %s58_s28, [#allocation3]  }
  0x8b   :  { %93 = dma.done.wait [#allocation3], 128  }
  0x8c   :  { %94 = vsyncadd [#allocation3], 4294967168 }
  0x8d   :  { %65 = vsyncpa [#allocation3], 1 }

</bundles_post_ra>
